<compile_context>
chip_gen: v7x
topology: tpu7x:2x2x1
jax: 0.10.0
libtpu: 0.0.40
codegen_flags: <defaults>
</compile_context>

<pallas_src>
import jax
import jax.numpy as jnp
from jax.experimental import pallas as pl
from jax.experimental.pallas import tpu as pltpu


def _round_up(n, m):
    return ((n + m - 1) // m) * m


def duel_kernel(x_ref, w1_ref, b1_ref, wq_ref, bq_ref, q_ref):
    # In-kernel cast of x to the matmul compute dtype (bf16 when enabled).
    # This is VPU work hidden under the x DMA; it's a no-op for the f32 path.
    xv = x_ref[...].astype(w1_ref.dtype)

    # fc1 + ReLU: MXU matmul with f32 accumulation; bias/ReLU stay in f32
    # (cheap VPU work; avoids bf16 elementwise emulation on v5e).
    h = jnp.dot(xv, w1_ref[...], preferred_element_type=jnp.float32)
    h = jnp.maximum(h + b1_ref[...], 0.0)

    # Fused dueling head: Q = h @ W_q + b_q (value head + mean-subtraction and
    # all biases already folded into W_q / b_q in the wrapper). W_q is f32 and
    # tiny, so no per-tile cast of h is needed.
    q = jnp.dot(h, wq_ref[...], preferred_element_type=jnp.float32) + bq_ref[...]

    q_ref[...] = q.astype(q_ref.dtype)


def duelnet_forward(x, w1, b1, wa, ba, wv, bv, *, block_batch=4096,
                    use_bf16=True, core_parallel=False):
    batch, state_dim = x.shape
    hidden_dim, action_dim = wa.shape

    # ---- algebraic folding (runs once, outside the kernel) -----------------
    # Q = V + A - mean_j(A) = h @ (wa - mean_j(wa) + wv) + (ba - mean(ba) + bv)
    wq = (wa - jnp.mean(wa, axis=1, keepdims=True) + wv).astype(jnp.float32)
    bq = (ba - jnp.mean(ba, axis=1, keepdims=True) + bv).astype(jnp.float32)

    # Only the (resident, KB-scale) fc1 weight is pre-cast to the MXU compute
    # dtype; x keeps its native dtype and is cast inside the kernel.
    wdt = jnp.bfloat16 if use_bf16 else jnp.float32
    w1k = w1.astype(wdt)
    b1k = b1.astype(jnp.float32)

    # ---- batch tiling (no padding pass; ragged last block is masked) -------
    align = 16 if use_bf16 else 8          # bf16 packs 16 sublanes per vreg
    tb = min(block_batch, _round_up(batch, align))
    tb = _round_up(tb, align)
    grid_steps = pl.cdiv(batch, tb)

    # Megacore split only pays off on v7x with a long batch grid; opt-in.
    if core_parallel and grid_steps >= 8:
        dim_sem = (pltpu.CORE_PARALLEL,)
    else:
        dim_sem = ("arbitrary",)

    q = pl.pallas_call(
        duel_kernel,
        out_shape=jax.ShapeDtypeStruct((batch, action_dim), jnp.float32),
        grid=(grid_steps,),
        in_specs=[
            pl.BlockSpec((tb, state_dim), lambda i: (i, 0)),          # streamed x tile
            pl.BlockSpec((state_dim, hidden_dim), lambda i: (0, 0)),  # VMEM-resident weights
            pl.BlockSpec((1, hidden_dim), lambda i: (0, 0)),
            pl.BlockSpec((hidden_dim, action_dim), lambda i: (0, 0)),
            pl.BlockSpec((1, action_dim), lambda i: (0, 0)),
        ],
        out_specs=pl.BlockSpec((tb, action_dim), lambda i: (i, 0)),
        compiler_params=pltpu.CompilerParams(
            dimension_semantics=dim_sem,
            vmem_limit_bytes=32 * 1024 * 1024,
        ),
    )(x, w1k, b1k, wq, bq)

    return q


def duelnet_reference(x, w1, b1, wa, ba, wv, bv):
    h = jnp.maximum(x @ w1 + b1, 0.0)
    A = h @ wa + ba
    V = h @ wv + bv
    return V + A - jnp.mean(A, axis=1, keepdims=True)


if __name__ == "__main__":
    # Small shapes consistent with the module's forward pass.
    batch, state_dim, hidden_dim, action_dim = 8, 16, 32, 4

    key = jax.random.PRNGKey(0)
    kx, k1, k2, k3, k4, k5, k6 = jax.random.split(key, 7)

    x = jax.random.normal(kx, (batch, state_dim), dtype=jnp.float32)

    # Deterministic synthetic parameters (PyTorch Linear shapes, stored transposed).
    w1 = jax.random.normal(k1, (state_dim, hidden_dim), dtype=jnp.float32) * 0.1
    b1 = jax.random.normal(k2, (1, hidden_dim), dtype=jnp.float32) * 0.1
    wa = jax.random.normal(k3, (hidden_dim, action_dim), dtype=jnp.float32) * 0.1
    ba = jax.random.normal(k4, (1, action_dim), dtype=jnp.float32) * 0.1
    wv = jax.random.normal(k5, (hidden_dim, 1), dtype=jnp.float32) * 0.1
    bv = jax.random.normal(k6, (1, 1), dtype=jnp.float32) * 0.1

    q_ref = duelnet_reference(x, w1, b1, wa, ba, wv, bv)

    # Exact-precision path (f32 operands, single block): tight match.
    q_f32 = duelnet_forward(x, w1, b1, wa, ba, wv, bv, use_bf16=False)
    jax.block_until_ready(q_f32)
    assert q_f32.shape == (batch, action_dim)
    assert jnp.allclose(q_f32, q_ref, atol=1e-5, rtol=1e-5), "f32 mismatch vs. reference"

    # Performance path (bf16 MXU operands, in-kernel cast, f32 accumulation).
    q_bf16 = duelnet_forward(x, w1, b1, wa, ba, wv, bv, use_bf16=True)
    jax.block_until_ready(q_bf16)
    assert jnp.allclose(q_bf16, q_ref, atol=3e-2, rtol=3e-2), "bf16 mismatch vs. reference"

    # Exercise the ragged batch grid (300 rows, tile 128 -> 3 blocks, last masked).
    xb = jax.random.normal(kx, (300, state_dim), dtype=jnp.float32)
    qb_ref = duelnet_reference(xb, w1, b1, wa, ba, wv, bv)
    qb = duelnet_forward(xb, w1, b1, wa, ba, wv, bv, block_batch=128, use_bf16=False)
    jax.block_until_ready(qb)
    assert qb.shape == (300, action_dim)
    assert jnp.allclose(qb, qb_ref, atol=1e-5, rtol=1e-5), "gridded path mismatch vs. reference"

    # Default large-tile path on the same inputs (single ragged block, grid=(1,)).
    qb1 = duelnet_forward(xb, w1, b1, wa, ba, wv, bv, use_bf16=False)
    jax.block_until_ready(qb1)
    assert jnp.allclose(qb1, qb_ref, atol=1e-5, rtol=1e-5), "single-block path mismatch"

    print("KERNEL_OK")
</pallas_src>

<mosaic_0001>
module attributes {stable_mosaic.version = 11 : i64} {
  func.func @duel_kernel(%arg0: i32, %arg1: memref<8x16xf32, #tpu.memory_space<vmem>>, %arg2: memref<16x32xf32, #tpu.memory_space<vmem>>, %arg3: memref<1x32xf32, #tpu.memory_space<vmem>>, %arg4: memref<32x4xf32, #tpu.memory_space<vmem>>, %arg5: memref<1x4xf32, #tpu.memory_space<vmem>>, %arg6: memref<8x4xf32, #tpu.memory_space<vmem>>) attributes {dimension_semantics = [#tpu.dimension_semantics<arbitrary>], iteration_bounds = array<i64: 1>, scalar_prefetch = 0 : i64, scratch_operands = 0 : i64, tpu.core_type = #tpu.core_type<tc>, window_params = [{transform_indices = @transform_0, window_bounds = array<i64: 8, 16>}, {pipeline_mode = #tpu.pipeline_mode<synchronous>, transform_indices = @transform_1, window_bounds = array<i64: 16, 32>}, {pipeline_mode = #tpu.pipeline_mode<synchronous>, transform_indices = @transform_2, window_bounds = array<i64: 1, 32>}, {pipeline_mode = #tpu.pipeline_mode<synchronous>, transform_indices = @transform_3, window_bounds = array<i64: 32, 4>}, {pipeline_mode = #tpu.pipeline_mode<synchronous>, transform_indices = @transform_4, window_bounds = array<i64: 1, 4>}, {transform_indices = @transform_5, window_bounds = array<i64: 8, 4>}]} {
    %c0 = arith.constant 0 : index
    %c0_0 = arith.constant 0 : index
    %0 = vector.load %arg1[%c0, %c0_0] : memref<8x16xf32, #tpu.memory_space<vmem>>, vector<8x16xf32>
    %c0_1 = arith.constant 0 : index
    %c0_2 = arith.constant 0 : index
    %1 = vector.load %arg2[%c0_1, %c0_2] : memref<16x32xf32, #tpu.memory_space<vmem>>, vector<16x32xf32>
    %cst = arith.constant dense<0.000000e+00> : vector<8x32xf32>
    %2 = tpu.matmul %0, %1, %cst {dimension_numbers = #tpu.dot_dimension_numbers<[1], [0], [0], [1], [0, 0, 1, 1], [], []>} : vector<8x16xf32>, vector<16x32xf32>, vector<8x32xf32> -> vector<8x32xf32>
    %c0_3 = arith.constant 0 : index
    %c0_4 = arith.constant 0 : index
    %3 = vector.load %arg3[%c0_3, %c0_4] : memref<1x32xf32, #tpu.memory_space<vmem>>, vector<1x32xf32>
    %4 = vector.broadcast %3 : vector<1x32xf32> to vector<8x32xf32>
    %5 = arith.addf %2, %4 : vector<8x32xf32>
    %cst_5 = arith.constant 0.000000e+00 : f32
    %6 = vector.broadcast %cst_5 : f32 to vector<8x32xf32>
    %7 = arith.maximumf %5, %6 : vector<8x32xf32>
    %c0_6 = arith.constant 0 : index
    %c0_7 = arith.constant 0 : index
    %8 = vector.load %arg4[%c0_6, %c0_7] : memref<32x4xf32, #tpu.memory_space<vmem>>, vector<32x4xf32>
    %cst_8 = arith.constant dense<0.000000e+00> : vector<8x4xf32>
    %9 = tpu.matmul %7, %8, %cst_8 {dimension_numbers = #tpu.dot_dimension_numbers<[1], [0], [0], [1], [0, 0, 1, 1], [], []>} : vector<8x32xf32>, vector<32x4xf32>, vector<8x4xf32> -> vector<8x4xf32>
    %c0_9 = arith.constant 0 : index
    %c0_10 = arith.constant 0 : index
    %10 = vector.load %arg5[%c0_9, %c0_10] : memref<1x4xf32, #tpu.memory_space<vmem>>, vector<1x4xf32>
    %11 = vector.broadcast %10 : vector<1x4xf32> to vector<8x4xf32>
    %12 = arith.addf %9, %11 : vector<8x4xf32>
    %c0_11 = arith.constant 0 : index
    %c0_12 = arith.constant 0 : index
    %13 = vector.load %arg6[%c0_11, %c0_12] : memref<8x4xf32, #tpu.memory_space<vmem>>, vector<8x4xf32>
    tpu.vector_store %arg6[%c0_11, %c0_12], %12 {strides = array<i32>} : memref<8x4xf32, #tpu.memory_space<vmem>>, vector<8x4xf32>,
    return
  }
  func.func @transform_0(%arg0: i32) -> (i32, i32) {
    %c0_i32 = arith.constant 0 : i32
    %c0_i32_0 = arith.constant 0 : i32
    return %arg0, %c0_i32 : i32, i32
  }
  func.func @transform_1(%arg0: i32) -> (i32, i32) {
    %c0_i32 = arith.constant 0 : i32
    %c0_i32_0 = arith.constant 0 : i32
    %c0_i32_1 = arith.constant 0 : i32
    return %c0_i32, %c0_i32_0 : i32, i32
  }
  func.func @transform_2(%arg0: i32) -> (i32, i32) {
    %c0_i32 = arith.constant 0 : i32
    %c0_i32_0 = arith.constant 0 : i32
    %c0_i32_1 = arith.constant 0 : i32
    return %c0_i32, %c0_i32_0 : i32, i32
  }
  func.func @transform_3(%arg0: i32) -> (i32, i32) {
    %c0_i32 = arith.constant 0 : i32
    %c0_i32_0 = arith.constant 0 : i32
    %c0_i32_1 = arith.constant 0 : i32
    return %c0_i32, %c0_i32_0 : i32, i32
  }
  func.func @transform_4(%arg0: i32) -> (i32, i32) {
    %c0_i32 = arith.constant 0 : i32
    %c0_i32_0 = arith.constant 0 : i32
    %c0_i32_1 = arith.constant 0 : i32
    return %c0_i32, %c0_i32_0 : i32, i32
  }
  func.func @transform_5(%arg0: i32) -> (i32, i32) {
    %c0_i32 = arith.constant 0 : i32
    %c0_i32_0 = arith.constant 0 : i32
    return %arg0, %c0_i32 : i32, i32
  }
}

</mosaic_0001>

<bundles_post_ra>
// kernel: tpu_custom_call.1
= control target key start
LH: loop header
LB: loop body
LE: loop exit
PB: predicated region body
PF: predicated region fallthrough
CT: control target
= control target key end

     0   :  { %v238_v0 = vmov 0.0|0.0   ;;  %vm239_vm0 = vmmov 0   ;;  %v240_v3 = vmov 0.0   ;;  %vm30_vm1 = vcmask 130048   ;;  %s301_s1 = inlined_call_operand.vmem [shape: f32[16,32], index: 1, kind: input, shape index: {}]   ;;  %s302_s3 = inlined_call_operand.vmem [shape: f32[32,4], index: 3, kind: input, shape index: {}]   ;;  %s303_s0 = inlined_call_operand.vmem [shape: f32[8,16], index: 0, kind: input, shape index: {}]   ;;  %s304_s2 = inlined_call_operand.vmem [shape: f32[1,32], index: 2, kind: input, shape index: {}]   ;;  %s305_s4 = inlined_call_operand.vmem [shape: f32[1,4], index: 4, kind: input, shape index: {}]   ;;  %s306_s5 = inlined_call_operand.vmem [shape: f32[8,4], index: 5, kind: output, shape index: {}]  }
   0x1   :  { %226 = vmatprep.subr.bf16.mxu0 %v238_v0  ;;  %v21_v1 = vld [vmem:[%s301_s1] sm:$0xff]  ;;  %v22_v2 = vld [vmem:[%s301_s1 + $0x8] sm:$0xff]  ;;  %212 = vmatprep.mubr.msk.f32.mxu0 %vm239_vm0, %v240_v3  ;;  %v107_v9 = vld [vmem:[%s302_s3 + $0x10] sm:$0xff]  ;;  %vm116_vm2 = vcmask 261120   ;;  %vm190_vm3 = vcmask 31744  }
   0x2   :  { %v227_v4 = vpack.c.bf16 %v22_v2, %v21_v1  ;;  %229 = vmatprep.subr.bf16.mxu1 %v238_v0  ;;  %v105_v5 = vld [vmem:[%s302_s3] sm:$0xff]  ;;  %v106_v6 = vld [vmem:[%s302_s3 + $0x8] sm:$0xff]  ;;  %223 = vmatprep.mubr.msk.f32.mxu1 %vm239_vm0, %v240_v3  ;;  %v108_v10 = vld [vmem:[%s302_s3 + $0x18] sm:$0xff] }
   0x3   :  { %v230_v7 = vpack.c.bf16 %v106_v6, %v105_v5  ;;  %v20_v8 = vld [vmem:[%s303_s0] sm:$0xff]  ;;  %v233_v11 = vpack.c.bf16 %v108_v10, %v107_v9 }
   0x4   :  { %228 = vmatpush3.bf16.msra.mxu0 %v227_v4  ;;  %v196_v12 = vld [vmem:[%s304_s2] ss:$0 sm:$0xff] }
   0x5   :  { %231 = vmatpush3.bf16.msra.mxu1 %v230_v7  ;;  %v198_v17 = vld [vmem:[%s305_s4] ss:$0 sm:$0xff] }
   0x6   :  { %232 = vmatprep.subr.bf16.mxu1 %v238_v0 }
   0x7   :  { %213 = vmatmul.mubr.msk.f32.vlgmr.msra.gmra.mrb[0].mxu0 %vm30_vm1, %v20_v8 }
   0x9   :  { %234 = vmatpush3.bf16.msra.mxu1 %v233_v11 }
  0xda   :  { %v100_v13 = vpop.f32.mrb[0].mxu0 }
  0xdb   :  { %v101_v14 = vadd.f32 %v196_v12, %v100_v13  ;;  %v214_v15 = vpop.f32.mrb[1].mxu0 }
  0xdd   :  { %v104_v16 = vmax.f32 %v101_v14, 0.0 }
  0xdf   :  { %224 = vmatmul.mubr.msk.f32.vlgmr.msra.gmra.mrb[0].mxu1 %vm116_vm2, %v104_v16 }
 0x1b2   :  { %v186_v18 = vpop.f32.mrb[0].mxu1 }
 0x1b3   :  { %v187_v19 = vadd.f32 %v198_v17, %v186_v18  ;;  %v225_v20 = vpop.f32.mrb[1].mxu1 }
 0x1b5   :  { %191 = vst.msk [vmem:[%s306_s5] sm:$0xff] %vm190_vm3, %v187_v19 }

</bundles_post_ra>
